<compile_context>
chip_gen: v7x
topology: tpu7x:2x2x1
jax: 0.10.0
libtpu: 0.0.40
codegen_flags: <defaults>
</compile_context>

<pallas_src>
import functools

import jax
import jax.numpy as jnp
from jax.experimental import pallas as pl
from jax.experimental.pallas import tpu as pltpu

LN_EPS = 1e-5      # torch nn.LayerNorm default
D_IN = 60          # fc1 in_features (timeseries * movement)
D_IN_PAD = 64      # padded to a multiple of 8 sublanes
N_EMB = 5          # embedding rows
N_EMB_PAD = 8      # padded to a multiple of 8 sublanes


def _layer_norm(h, gamma, beta, eps=LN_EPS):
    mu = jnp.mean(h, axis=-1, keepdims=True)
    var = jnp.mean((h - mu) ** 2, axis=-1, keepdims=True)  # biased, like torch
    return (h - mu) * jax.lax.rsqrt(var + eps) * gamma + beta


def critic_kernel(ids_ref, x_ref, table_ref,
                  w1_ref, b1_ref, g1_ref, be1_ref,
                  w2_ref, b2_ref, g2_ref, be2_ref,
                  w3_ref, b3_ref, g3_ref, be3_ref,
                  w4_ref, b4_ref,
                  o_ref):
    tm = x_ref.shape[0]
    x = x_ref[...]                       # (tm, 64) f32, cols 60..63 are zero
    ids = ids_ref[...]                   # (tm, 1) int32

    # Embedding lookup in-kernel: one-hot [tm, 8] @ resident [8, 256] table.
    onehot = (jax.lax.broadcasted_iota(jnp.int32, (tm, N_EMB_PAD), 1)
              == ids).astype(jnp.float32)
    emb = jnp.dot(onehot, table_ref[...],
                  preferred_element_type=jnp.float32)          # (tm, 256)

    # fc1 + agent embedding + LN + relu
    h = jnp.dot(x, w1_ref[...], preferred_element_type=jnp.float32)
    h = h + b1_ref[...] + emb
    h = jnp.maximum(_layer_norm(h, g1_ref[...], be1_ref[...]), 0.0)

    # fc2 + LN + relu
    h = jnp.dot(h, w2_ref[...], preferred_element_type=jnp.float32) + b2_ref[...]
    h = jnp.maximum(_layer_norm(h, g2_ref[...], be2_ref[...]), 0.0)

    # fc3 + LN + relu
    h = jnp.dot(h, w3_ref[...], preferred_element_type=jnp.float32) + b3_ref[...]
    h = jnp.maximum(_layer_norm(h, g3_ref[...], be3_ref[...]), 0.0)

    # fc4: avoid an N=1 MXU matmul -> VPU multiply + lane reduce, stored
    # lane-dense as a (1, tm) row.
    out_row = jnp.sum(h * w4_ref[...], axis=-1)                # (tm,)
    o_ref[...] = (out_row[None, :] + b4_ref[...]).astype(o_ref.dtype)


def init_params(key):
    """Deterministic synthetic parameters matching the torch module's shapes
    (stored in the kernel-friendly padded / transposed layout)."""
    ks = jax.random.split(key, 12)
    p = {}
    emb = jax.random.normal(ks[0], (N_EMB, 256), jnp.float32) * 0.1
    p["emb"] = jnp.zeros((N_EMB_PAD, 256), jnp.float32).at[:N_EMB].set(emb)
    w1 = jax.random.normal(ks[1], (D_IN, 256), jnp.float32) * 0.1
    p["w1"] = jnp.zeros((D_IN_PAD, 256), jnp.float32).at[:D_IN].set(w1)
    p["b1"] = jax.random.normal(ks[2], (1, 256), jnp.float32) * 0.1
    p["w2"] = jax.random.normal(ks[3], (256, 128), jnp.float32) * 0.1
    p["b2"] = jax.random.normal(ks[4], (1, 128), jnp.float32) * 0.1
    p["w3"] = jax.random.normal(ks[5], (128, 64), jnp.float32) * 0.1
    p["b3"] = jax.random.normal(ks[6], (1, 64), jnp.float32) * 0.1
    p["w4"] = jax.random.normal(ks[7], (1, 64), jnp.float32) * 0.1   # row vector
    p["b4"] = jax.random.normal(ks[8], (1, 1), jnp.float32) * 0.1
    # LayerNorm affine params (torch inits gamma=1, beta=0)
    p["g1"] = jnp.ones((1, 256), jnp.float32)
    p["be1"] = jnp.zeros((1, 256), jnp.float32)
    p["g2"] = jnp.ones((1, 128), jnp.float32)
    p["be2"] = jnp.zeros((1, 128), jnp.float32)
    p["g3"] = jnp.ones((1, 64), jnp.float32)
    p["be3"] = jnp.zeros((1, 64), jnp.float32)
    return p


def _round_up(x, m):
    return (x + m - 1) // m * m


@functools.partial(jax.jit, static_argnames=("tm",))
def critic_forward(agent_id, x_local, params, tm=256):
    """Pallas implementation of CriticNetwork.forward(x1, x2).

    agent_id : int array, shape env_batch_nagents (values in [0, 5))
    x_local  : float array, shape env_batch_nagents + (timeseries, movement, feature)
               with timeseries * movement == 60.
    tm       : batch tile (multiple of 128; 256+ preferred on v6e/v7x).  On v7x
               pick B so the parallel grid has >= 2 steps to use both TensorCores.
    Returns  : float32 array, shape env_batch_nagents + (1,)
    """
    assert tm % 128 == 0, "tm must be a multiple of 128"
    env_batch_nagents = x_local.shape[:-3]
    T, M, _F = x_local.shape[-3:]
    d_in = T * M
    assert d_in <= D_IN_PAD

    xl = x_local[..., 0].reshape(-1, d_in).astype(jnp.float32)   # [B, 60]
    B = xl.shape[0]

    # Shrink the tile for tiny batches, otherwise pad the batch to a tile multiple.
    tm_eff = min(tm, _round_up(B, 8))
    B_pad = _round_up(B, tm_eff)

    xl = jnp.pad(xl, ((0, B_pad - B), (0, D_IN_PAD - d_in)))          # [B_pad, 64]
    ids = jnp.pad(agent_id.reshape(-1).astype(jnp.int32), (0, B_pad - B))
    ids = ids.reshape(B_pad, 1)                                       # [B_pad, 1]

    full = lambda shape: pl.BlockSpec(shape, lambda i: (0, 0))        # resident blocks

    out = pl.pallas_call(
        critic_kernel,
        out_shape=jax.ShapeDtypeStruct((1, B_pad), jnp.float32),      # lane-dense
        grid_spec=pltpu.PrefetchScalarGridSpec(
            num_scalar_prefetch=0,
            grid=(B_pad // tm_eff,),
            in_specs=[
                pl.BlockSpec((tm_eff, 1), lambda i: (i, 0)),          # agent ids
                pl.BlockSpec((tm_eff, D_IN_PAD), lambda i: (i, 0)),   # x tile
                full((N_EMB_PAD, 256)),                               # emb table
                full((D_IN_PAD, 256)), full((1, 256)), full((1, 256)), full((1, 256)),  # fc1/ln1
                full((256, 128)), full((1, 128)), full((1, 128)), full((1, 128)),       # fc2/ln2
                full((128, 64)), full((1, 64)), full((1, 64)), full((1, 64)),           # fc3/ln3
                full((1, 64)), full((1, 1)),                                            # fc4
            ],
            out_specs=pl.BlockSpec((1, tm_eff), lambda i: (0, i)),
        ),
        compiler_params=pltpu.CompilerParams(
            dimension_semantics=("parallel",)),
    )(
        ids, xl, params["emb"],
        params["w1"], params["b1"], params["g1"], params["be1"],
        params["w2"], params["b2"], params["g2"], params["be2"],
        params["w3"], params["b3"], params["g3"], params["be3"],
        params["w4"], params["b4"],
    )
    return out[0, :B].reshape(*env_batch_nagents, 1)


def critic_forward_ref(agent_id, x_local, params):
    """Pure-JAX reference mirroring the torch forward, for verification."""
    env_batch_nagents = x_local.shape[:-3]
    T, M, _F = x_local.shape[-3:]
    xl = x_local[..., 0].reshape(-1, T * M).astype(jnp.float32)
    emb = jnp.take(params["emb"], agent_id.reshape(-1).astype(jnp.int32), axis=0)
    h = xl @ params["w1"][: T * M] + params["b1"]
    h = jnp.maximum(_layer_norm(h + emb, params["g1"], params["be1"]), 0.0)
    h = h @ params["w2"] + params["b2"]
    h = jnp.maximum(_layer_norm(h, params["g2"], params["be2"]), 0.0)
    h = h @ params["w3"] + params["b3"]
    h = jnp.maximum(_layer_norm(h, params["g3"], params["be3"]), 0.0)
    out = jnp.sum(h * params["w4"], axis=-1, keepdims=True) + params["b4"]
    return out.reshape(*env_batch_nagents, -1)


if __name__ == "__main__":
    key = jax.random.PRNGKey(0)
    k_p, k_id, k_x, k_id2, k_x2 = jax.random.split(key, 5)

    params = init_params(k_p)

    # Small shapes: env_batch=2, n_agents=4 (flattened B=8),
    # timeseries=12, movement=5 (12*5 == 60 == fc1 in_features), feature_num=3
    env, nagents, T, M, F_ = 2, 4, 12, 5, 3
    agent_id = jax.random.randint(k_id, (env, nagents), 0, 5, dtype=jnp.int32)
    x_local = jax.random.normal(k_x, (env, nagents, T, M, F_), jnp.float32)

    out = jax.block_until_ready(critic_forward(agent_id, x_local, params))
    ref = critic_forward_ref(agent_id, x_local, params)
    assert out.shape == (env, nagents, 1), out.shape
    assert jnp.allclose(out, ref, atol=5e-4, rtol=5e-4)

    # Second check: batch not a multiple of the tile (exercises padding,
    # tm=256 tiles, grid > 1 and the lane-dense output path).
    env2, nagents2 = 16, 20                      # B = 320 -> padded to 512, grid=2
    agent_id2 = jax.random.randint(k_id2, (env2, nagents2), 0, 5, dtype=jnp.int32)
    x_local2 = jax.random.normal(k_x2, (env2, nagents2, T, M, F_), jnp.float32)

    out2 = jax.block_until_ready(critic_forward(agent_id2, x_local2, params))
    ref2 = critic_forward_ref(agent_id2, x_local2, params)
    assert out2.shape == (env2, nagents2, 1), out2.shape
    assert jnp.allclose(out2, ref2, atol=5e-4, rtol=5e-4)

    print("KERNEL_OK")
</pallas_src>

<mosaic_0001>
module attributes {stable_mosaic.version = 11 : i64} {
  func.func @critic_kernel(%arg0: i32, %arg1: memref<8x1xi32, #tpu.memory_space<vmem>>, %arg2: memref<8x64xf32, #tpu.memory_space<vmem>>, %arg3: memref<8x256xf32, #tpu.memory_space<vmem>>, %arg4: memref<64x256xf32, #tpu.memory_space<vmem>>, %arg5: memref<1x256xf32, #tpu.memory_space<vmem>>, %arg6: memref<1x256xf32, #tpu.memory_space<vmem>>, %arg7: memref<1x256xf32, #tpu.memory_space<vmem>>, %arg8: memref<256x128xf32, #tpu.memory_space<vmem>>, %arg9: memref<1x128xf32, #tpu.memory_space<vmem>>, %arg10: memref<1x128xf32, #tpu.memory_space<vmem>>, %arg11: memref<1x128xf32, #tpu.memory_space<vmem>>, %arg12: memref<128x64xf32, #tpu.memory_space<vmem>>, %arg13: memref<1x64xf32, #tpu.memory_space<vmem>>, %arg14: memref<1x64xf32, #tpu.memory_space<vmem>>, %arg15: memref<1x64xf32, #tpu.memory_space<vmem>>, %arg16: memref<1x64xf32, #tpu.memory_space<vmem>>, %arg17: memref<1x1xf32, #tpu.memory_space<vmem>>, %arg18: memref<1x8xf32, #tpu.memory_space<vmem>>) attributes {dimension_semantics = [#tpu.dimension_semantics<parallel>], iteration_bounds = array<i64: 1>, scalar_prefetch = 0 : i64, scratch_operands = 0 : i64, tpu.core_type = #tpu.core_type<tc>, window_params = [{transform_indices = @transform_0, window_bounds = array<i64: 8, 1>}, {transform_indices = @transform_1, window_bounds = array<i64: 8, 64>}, {pipeline_mode = #tpu.pipeline_mode<synchronous>, transform_indices = @transform_2, window_bounds = array<i64: 8, 256>}, {pipeline_mode = #tpu.pipeline_mode<synchronous>, transform_indices = @transform_3, window_bounds = array<i64: 64, 256>}, {pipeline_mode = #tpu.pipeline_mode<synchronous>, transform_indices = @transform_4, window_bounds = array<i64: 1, 256>}, {pipeline_mode = #tpu.pipeline_mode<synchronous>, transform_indices = @transform_5, window_bounds = array<i64: 1, 256>}, {pipeline_mode = #tpu.pipeline_mode<synchronous>, transform_indices = @transform_6, window_bounds = array<i64: 1, 256>}, {pipeline_mode = #tpu.pipeline_mode<synchronous>, transform_indices = @transform_7, window_bounds = array<i64: 256, 128>}, {pipeline_mode = #tpu.pipeline_mode<synchronous>, transform_indices = @transform_8, window_bounds = array<i64: 1, 128>}, {pipeline_mode = #tpu.pipeline_mode<synchronous>, transform_indices = @transform_9, window_bounds = array<i64: 1, 128>}, {pipeline_mode = #tpu.pipeline_mode<synchronous>, transform_indices = @transform_10, window_bounds = array<i64: 1, 128>}, {pipeline_mode = #tpu.pipeline_mode<synchronous>, transform_indices = @transform_11, window_bounds = array<i64: 128, 64>}, {pipeline_mode = #tpu.pipeline_mode<synchronous>, transform_indices = @transform_12, window_bounds = array<i64: 1, 64>}, {pipeline_mode = #tpu.pipeline_mode<synchronous>, transform_indices = @transform_13, window_bounds = array<i64: 1, 64>}, {pipeline_mode = #tpu.pipeline_mode<synchronous>, transform_indices = @transform_14, window_bounds = array<i64: 1, 64>}, {pipeline_mode = #tpu.pipeline_mode<synchronous>, transform_indices = @transform_15, window_bounds = array<i64: 1, 64>}, {pipeline_mode = #tpu.pipeline_mode<synchronous>, transform_indices = @transform_16, window_bounds = array<i64: 1, 1>}, {transform_indices = @transform_17, window_bounds = array<i64: 1, 8>}]} {
    %c0 = arith.constant 0 : index
    %c0_0 = arith.constant 0 : index
    %0 = vector.load %arg2[%c0, %c0_0] : memref<8x64xf32, #tpu.memory_space<vmem>>, vector<8x64xf32>
    %c0_1 = arith.constant 0 : index
    %c0_2 = arith.constant 0 : index
    %1 = vector.load %arg1[%c0_1, %c0_2] : memref<8x1xi32, #tpu.memory_space<vmem>>, vector<8x1xi32>
    %2 = tpu.iota {dimensions = array<i32: 1>} : vector<8x8xi32>
    %3 = vector.broadcast %1 : vector<8x1xi32> to vector<8x8xi32>
    %4 = arith.cmpi eq, %2, %3 : vector<8x8xi32>
    %5 = arith.extui %4 : vector<8x8xi1> to vector<8x8xi32>
    %6 = arith.sitofp %5 : vector<8x8xi32> to vector<8x8xf32>
    %c0_3 = arith.constant 0 : index
    %c0_4 = arith.constant 0 : index
    %7 = vector.load %arg3[%c0_3, %c0_4] : memref<8x256xf32, #tpu.memory_space<vmem>>, vector<8x256xf32>
    %cst = arith.constant dense<0.000000e+00> : vector<8x256xf32>
    %8 = tpu.matmul %6, %7, %cst {dimension_numbers = #tpu.dot_dimension_numbers<[1], [0], [0], [1], [0, 0, 1, 1], [], []>} : vector<8x8xf32>, vector<8x256xf32>, vector<8x256xf32> -> vector<8x256xf32>
    %c0_5 = arith.constant 0 : index
    %c0_6 = arith.constant 0 : index
    %9 = vector.load %arg4[%c0_5, %c0_6] : memref<64x256xf32, #tpu.memory_space<vmem>>, vector<64x256xf32>
    %cst_7 = arith.constant dense<0.000000e+00> : vector<8x256xf32>
    %10 = tpu.matmul %0, %9, %cst_7 {dimension_numbers = #tpu.dot_dimension_numbers<[1], [0], [0], [1], [0, 0, 1, 1], [], []>} : vector<8x64xf32>, vector<64x256xf32>, vector<8x256xf32> -> vector<8x256xf32>
    %c0_8 = arith.constant 0 : index
    %c0_9 = arith.constant 0 : index
    %11 = vector.load %arg5[%c0_8, %c0_9] : memref<1x256xf32, #tpu.memory_space<vmem>>, vector<1x256xf32>
    %12 = vector.broadcast %11 : vector<1x256xf32> to vector<8x256xf32>
    %13 = arith.addf %10, %12 : vector<8x256xf32>
    %14 = arith.addf %13, %8 : vector<8x256xf32>
    %c0_10 = arith.constant 0 : index
    %c0_11 = arith.constant 0 : index
    %15 = vector.load %arg6[%c0_10, %c0_11] : memref<1x256xf32, #tpu.memory_space<vmem>>, vector<1x256xf32>
    %c0_12 = arith.constant 0 : index
    %c0_13 = arith.constant 0 : index
    %16 = vector.load %arg7[%c0_12, %c0_13] : memref<1x256xf32, #tpu.memory_space<vmem>>, vector<1x256xf32>
    %cst_14 = arith.constant dense<0.000000e+00> : vector<8xf32>
    %17 = vector.multi_reduction <add>, %14, %cst_14 [1] : vector<8x256xf32> to vector<8xf32>
    %18 = vector.shape_cast %17 : vector<8xf32> to vector<8x1xf32>
    %cst_15 = arith.constant 2.560000e+02 : f32
    %19 = vector.broadcast %cst_15 : f32 to vector<8x1xf32>
    %20 = arith.divf %18, %19 : vector<8x1xf32>
    %21 = vector.broadcast %20 : vector<8x1xf32> to vector<8x256xf32>
    %22 = arith.subf %14, %21 : vector<8x256xf32>
    %23 = arith.mulf %22, %22 : vector<8x256xf32>
    %cst_16 = arith.constant dense<0.000000e+00> : vector<8xf32>
    %24 = vector.multi_reduction <add>, %23, %cst_16 [1] : vector<8x256xf32> to vector<8xf32>
    %25 = vector.shape_cast %24 : vector<8xf32> to vector<8x1xf32>
    %cst_17 = arith.constant 2.560000e+02 : f32
    %26 = vector.broadcast %cst_17 : f32 to vector<8x1xf32>
    %27 = arith.divf %25, %26 : vector<8x1xf32>
    %28 = vector.broadcast %20 : vector<8x1xf32> to vector<8x256xf32>
    %29 = arith.subf %14, %28 : vector<8x256xf32>
    %cst_18 = arith.constant 9.99999974E-6 : f32
    %30 = vector.broadcast %cst_18 : f32 to vector<8x1xf32>
    %31 = arith.addf %27, %30 : vector<8x1xf32>
    %32 = math.rsqrt %31 : vector<8x1xf32>
    %33 = vector.broadcast %32 : vector<8x1xf32> to vector<8x256xf32>
    %34 = arith.mulf %29, %33 : vector<8x256xf32>
    %35 = vector.broadcast %15 : vector<1x256xf32> to vector<8x256xf32>
    %36 = arith.mulf %34, %35 : vector<8x256xf32>
    %37 = vector.broadcast %16 : vector<1x256xf32> to vector<8x256xf32>
    %38 = arith.addf %36, %37 : vector<8x256xf32>
    %cst_19 = arith.constant 0.000000e+00 : f32
    %39 = vector.broadcast %cst_19 : f32 to vector<8x256xf32>
    %40 = arith.maximumf %38, %39 : vector<8x256xf32>
    %c0_20 = arith.constant 0 : index
    %c0_21 = arith.constant 0 : index
    %41 = vector.load %arg8[%c0_20, %c0_21] : memref<256x128xf32, #tpu.memory_space<vmem>>, vector<256x128xf32>
    %cst_22 = arith.constant dense<0.000000e+00> : vector<8x128xf32>
    %42 = tpu.matmul %40, %41, %cst_22 {dimension_numbers = #tpu.dot_dimension_numbers<[1], [0], [0], [1], [0, 0, 1, 1], [], []>} : vector<8x256xf32>, vector<256x128xf32>, vector<8x128xf32> -> vector<8x128xf32>
    %c0_23 = arith.constant 0 : index
    %c0_24 = arith.constant 0 : index
    %43 = vector.load %arg9[%c0_23, %c0_24] : memref<1x128xf32, #tpu.memory_space<vmem>>, vector<1x128xf32>
    %44 = vector.broadcast %43 : vector<1x128xf32> to vector<8x128xf32>
    %45 = arith.addf %42, %44 : vector<8x128xf32>
    %c0_25 = arith.constant 0 : index
    %c0_26 = arith.constant 0 : index
    %46 = vector.load %arg10[%c0_25, %c0_26] : memref<1x128xf32, #tpu.memory_space<vmem>>, vector<1x128xf32>
    %c0_27 = arith.constant 0 : index
    %c0_28 = arith.constant 0 : index
    %47 = vector.load %arg11[%c0_27, %c0_28] : memref<1x128xf32, #tpu.memory_space<vmem>>, vector<1x128xf32>
    %cst_29 = arith.constant dense<0.000000e+00> : vector<8xf32>
    %48 = vector.multi_reduction <add>, %45, %cst_29 [1] : vector<8x128xf32> to vector<8xf32>
    %49 = vector.shape_cast %48 : vector<8xf32> to vector<8x1xf32>
    %cst_30 = arith.constant 1.280000e+02 : f32
    %50 = vector.broadcast %cst_30 : f32 to vector<8x1xf32>
    %51 = arith.divf %49, %50 : vector<8x1xf32>
    %52 = vector.broadcast %51 : vector<8x1xf32> to vector<8x128xf32>
    %53 = arith.subf %45, %52 : vector<8x128xf32>
    %54 = arith.mulf %53, %53 : vector<8x128xf32>
    %cst_31 = arith.constant dense<0.000000e+00> : vector<8xf32>
    %55 = vector.multi_reduction <add>, %54, %cst_31 [1] : vector<8x128xf32> to vector<8xf32>
    %56 = vector.shape_cast %55 : vector<8xf32> to vector<8x1xf32>
    %cst_32 = arith.constant 1.280000e+02 : f32
    %57 = vector.broadcast %cst_32 : f32 to vector<8x1xf32>
    %58 = arith.divf %56, %57 : vector<8x1xf32>
    %59 = vector.broadcast %51 : vector<8x1xf32> to vector<8x128xf32>
    %60 = arith.subf %45, %59 : vector<8x128xf32>
    %cst_33 = arith.constant 9.99999974E-6 : f32
    %61 = vector.broadcast %cst_33 : f32 to vector<8x1xf32>
    %62 = arith.addf %58, %61 : vector<8x1xf32>
    %63 = math.rsqrt %62 : vector<8x1xf32>
    %64 = vector.broadcast %63 : vector<8x1xf32> to vector<8x128xf32>
    %65 = arith.mulf %60, %64 : vector<8x128xf32>
    %66 = vector.broadcast %46 : vector<1x128xf32> to vector<8x128xf32>
    %67 = arith.mulf %65, %66 : vector<8x128xf32>
    %68 = vector.broadcast %47 : vector<1x128xf32> to vector<8x128xf32>
    %69 = arith.addf %67, %68 : vector<8x128xf32>
    %cst_34 = arith.constant 0.000000e+00 : f32
    %70 = vector.broadcast %cst_34 : f32 to vector<8x128xf32>
    %71 = arith.maximumf %69, %70 : vector<8x128xf32>
    %c0_35 = arith.constant 0 : index
    %c0_36 = arith.constant 0 : index
    %72 = vector.load %arg12[%c0_35, %c0_36] : memref<128x64xf32, #tpu.memory_space<vmem>>, vector<128x64xf32>
    %cst_37 = arith.constant dense<0.000000e+00> : vector<8x64xf32>
    %73 = tpu.matmul %71, %72, %cst_37 {dimension_numbers = #tpu.dot_dimension_numbers<[1], [0], [0], [1], [0, 0, 1, 1], [], []>} : vector<8x128xf32>, vector<128x64xf32>, vector<8x64xf32> -> vector<8x64xf32>
    %c0_38 = arith.constant 0 : index
    %c0_39 = arith.constant 0 : index
    %74 = vector.load %arg13[%c0_38, %c0_39] : memref<1x64xf32, #tpu.memory_space<vmem>>, vector<1x64xf32>
    %75 = vector.broadcast %74 : vector<1x64xf32> to vector<8x64xf32>
    %76 = arith.addf %73, %75 : vector<8x64xf32>
    %c0_40 = arith.constant 0 : index
    %c0_41 = arith.constant 0 : index
    %77 = vector.load %arg14[%c0_40, %c0_41] : memref<1x64xf32, #tpu.memory_space<vmem>>, vector<1x64xf32>
    %c0_42 = arith.constant 0 : index
    %c0_43 = arith.constant 0 : index
    %78 = vector.load %arg15[%c0_42, %c0_43] : memref<1x64xf32, #tpu.memory_space<vmem>>, vector<1x64xf32>
    %cst_44 = arith.constant dense<0.000000e+00> : vector<8xf32>
    %79 = vector.multi_reduction <add>, %76, %cst_44 [1] : vector<8x64xf32> to vector<8xf32>
    %80 = vector.shape_cast %79 : vector<8xf32> to vector<8x1xf32>
    %cst_45 = arith.constant 6.400000e+01 : f32
    %81 = vector.broadcast %cst_45 : f32 to vector<8x1xf32>
    %82 = arith.divf %80, %81 : vector<8x1xf32>
    %83 = vector.broadcast %82 : vector<8x1xf32> to vector<8x64xf32>
    %84 = arith.subf %76, %83 : vector<8x64xf32>
    %85 = arith.mulf %84, %84 : vector<8x64xf32>
    %cst_46 = arith.constant dense<0.000000e+00> : vector<8xf32>
    %86 = vector.multi_reduction <add>, %85, %cst_46 [1] : vector<8x64xf32> to vector<8xf32>
    %87 = vector.shape_cast %86 : vector<8xf32> to vector<8x1xf32>
    %cst_47 = arith.constant 6.400000e+01 : f32
    %88 = vector.broadcast %cst_47 : f32 to vector<8x1xf32>
    %89 = arith.divf %87, %88 : vector<8x1xf32>
    %90 = vector.broadcast %82 : vector<8x1xf32> to vector<8x64xf32>
    %91 = arith.subf %76, %90 : vector<8x64xf32>
    %cst_48 = arith.constant 9.99999974E-6 : f32
    %92 = vector.broadcast %cst_48 : f32 to vector<8x1xf32>
    %93 = arith.addf %89, %92 : vector<8x1xf32>
    %94 = math.rsqrt %93 : vector<8x1xf32>
    %95 = vector.broadcast %94 : vector<8x1xf32> to vector<8x64xf32>
    %96 = arith.mulf %91, %95 : vector<8x64xf32>
    %97 = vector.broadcast %77 : vector<1x64xf32> to vector<8x64xf32>
    %98 = arith.mulf %96, %97 : vector<8x64xf32>
    %99 = vector.broadcast %78 : vector<1x64xf32> to vector<8x64xf32>
    %100 = arith.addf %98, %99 : vector<8x64xf32>
    %cst_49 = arith.constant 0.000000e+00 : f32
    %101 = vector.broadcast %cst_49 : f32 to vector<8x64xf32>
    %102 = arith.maximumf %100, %101 : vector<8x64xf32>
    %c0_50 = arith.constant 0 : index
    %c0_51 = arith.constant 0 : index
    %103 = vector.load %arg16[%c0_50, %c0_51] : memref<1x64xf32, #tpu.memory_space<vmem>>, vector<1x64xf32>
    %104 = vector.broadcast %103 : vector<1x64xf32> to vector<8x64xf32>
    %105 = arith.mulf %102, %104 : vector<8x64xf32>
    %cst_52 = arith.constant dense<0.000000e+00> : vector<8xf32>
    %106 = vector.multi_reduction <add>, %105, %cst_52 [1] : vector<8x64xf32> to vector<8xf32>
    %107 = vector.shape_cast %106 : vector<8xf32> to vector<1x8xf32>
    %c0_53 = arith.constant 0 : index
    %c0_54 = arith.constant 0 : index
    %108 = vector.load %arg17[%c0_53, %c0_54] : memref<1x1xf32, #tpu.memory_space<vmem>>, vector<1x1xf32>
    %109 = vector.broadcast %108 : vector<1x1xf32> to vector<1x8xf32>
    %110 = arith.addf %107, %109 : vector<1x8xf32>
    %c0_55 = arith.constant 0 : index
    %c0_56 = arith.constant 0 : index
    %111 = vector.load %arg18[%c0_55, %c0_56] : memref<1x8xf32, #tpu.memory_space<vmem>>, vector<1x8xf32>
    tpu.vector_store %arg18[%c0_55, %c0_56], %110 {strides = array<i32>} : memref<1x8xf32, #tpu.memory_space<vmem>>, vector<1x8xf32>,
    return
  }
  func.func @transform_0(%arg0: i32) -> (i32, i32) {
    %c0_i32 = arith.constant 0 : i32
    %c0_i32_0 = arith.constant 0 : i32
    return %arg0, %c0_i32 : i32, i32
  }
  func.func @transform_1(%arg0: i32) -> (i32, i32) {
    %c0_i32 = arith.constant 0 : i32
    %c0_i32_0 = arith.constant 0 : i32
    return %arg0, %c0_i32 : i32, i32
  }
  func.func @transform_2(%arg0: i32) -> (i32, i32) {
    %c0_i32 = arith.constant 0 : i32
    %c0_i32_0 = arith.constant 0 : i32
    %c0_i32_1 = arith.constant 0 : i32
    return %c0_i32, %c0_i32_0 : i32, i32
  }
  func.func @transform_3(%arg0: i32) -> (i32, i32) {
    %c0_i32 = arith.constant 0 : i32
    %c0_i32_0 = arith.constant 0 : i32
    %c0_i32_1 = arith.constant 0 : i32
    return %c0_i32, %c0_i32_0 : i32, i32
  }
  func.func @transform_4(%arg0: i32) -> (i32, i32) {
    %c0_i32 = arith.constant 0 : i32
    %c0_i32_0 = arith.constant 0 : i32
    %c0_i32_1 = arith.constant 0 : i32
    return %c0_i32, %c0_i32_0 : i32, i32
  }
  func.func @transform_5(%arg0: i32) -> (i32, i32) {
    %c0_i32 = arith.constant 0 : i32
    %c0_i32_0 = arith.constant 0 : i32
    %c0_i32_1 = arith.constant 0 : i32
    return %c0_i32, %c0_i32_0 : i32, i32
  }
  func.func @transform_6(%arg0: i32) -> (i32, i32) {
    %c0_i32 = arith.constant 0 : i32
    %c0_i32_0 = arith.constant 0 : i32
    %c0_i32_1 = arith.constant 0 : i32
    return %c0_i32, %c0_i32_0 : i32, i32
  }
  func.func @transform_7(%arg0: i32) -> (i32, i32) {
    %c0_i32 = arith.constant 0 : i32
    %c0_i32_0 = arith.constant 0 : i32
    %c0_i32_1 = arith.constant 0 : i32
    return %c0_i32, %c0_i32_0 : i32, i32
  }
  func.func @transform_8(%arg0: i32) -> (i32, i32) {
    %c0_i32 = arith.constant 0 : i32
    %c0_i32_0 = arith.constant 0 : i32
    %c0_i32_1 = arith.constant 0 : i32
    return %c0_i32, %c0_i32_0 : i32, i32
  }
  func.func @transform_9(%arg0: i32) -> (i32, i32) {
    %c0_i32 = arith.constant 0 : i32
    %c0_i32_0 = arith.constant 0 : i32
    %c0_i32_1 = arith.constant 0 : i32
    return %c0_i32, %c0_i32_0 : i32, i32
  }
  func.func @transform_10(%arg0: i32) -> (i32, i32) {
    %c0_i32 = arith.constant 0 : i32
    %c0_i32_0 = arith.constant 0 : i32
    %c0_i32_1 = arith.constant 0 : i32
    return %c0_i32, %c0_i32_0 : i32, i32
  }
  func.func @transform_11(%arg0: i32) -> (i32, i32) {
    %c0_i32 = arith.constant 0 : i32
    %c0_i32_0 = arith.constant 0 : i32
    %c0_i32_1 = arith.constant 0 : i32
    return %c0_i32, %c0_i32_0 : i32, i32
  }
  func.func @transform_12(%arg0: i32) -> (i32, i32) {
    %c0_i32 = arith.constant 0 : i32
    %c0_i32_0 = arith.constant 0 : i32
    %c0_i32_1 = arith.constant 0 : i32
    return %c0_i32, %c0_i32_0 : i32, i32
  }
  func.func @transform_13(%arg0: i32) -> (i32, i32) {
    %c0_i32 = arith.constant 0 : i32
    %c0_i32_0 = arith.constant 0 : i32
    %c0_i32_1 = arith.constant 0 : i32
    return %c0_i32, %c0_i32_0 : i32, i32
  }
  func.func @transform_14(%arg0: i32) -> (i32, i32) {
    %c0_i32 = arith.constant 0 : i32
    %c0_i32_0 = arith.constant 0 : i32
    %c0_i32_1 = arith.constant 0 : i32
    return %c0_i32, %c0_i32_0 : i32, i32
  }
  func.func @transform_15(%arg0: i32) -> (i32, i32) {
    %c0_i32 = arith.constant 0 : i32
    %c0_i32_0 = arith.constant 0 : i32
    %c0_i32_1 = arith.constant 0 : i32
    return %c0_i32, %c0_i32_0 : i32, i32
  }
  func.func @transform_16(%arg0: i32) -> (i32, i32) {
    %c0_i32 = arith.constant 0 : i32
    %c0_i32_0 = arith.constant 0 : i32
    %c0_i32_1 = arith.constant 0 : i32
    return %c0_i32, %c0_i32_0 : i32, i32
  }
  func.func @transform_17(%arg0: i32) -> (i32, i32) {
    %c0_i32 = arith.constant 0 : i32
    %c0_i32_0 = arith.constant 0 : i32
    return %c0_i32, %arg0 : i32, i32
  }
}

</mosaic_0001>

<bundles_post_ra>
// kernel: squeeze.2
= control target key start
LH: loop header
LB: loop body
LE: loop exit
PB: predicated region body
PF: predicated region fallthrough
CT: control target
= control target key end

     0   :  { %vm6_vm0 = vcmask 1043458   ;;  %vm10_vm1 = vcmask 1045508   ;;  %vm14_vm2 = vcmask 1047558   ;;  %s19_s6 = smov 3  ;;  %s22_s7 = smov 12  ;;  %vm16_vm3 = vcmask 39936   ;;  %s552_s0 = inlined_call_operand.vmem [shape: f32[2,4,12,5,1], index: 0, kind: input, shape index: {}]   ;;  %s553_s1 = inlined_call_operand.vmem [shape: f32[8,60], index: 1, kind: output, shape index: {}]  }
   0x1   :  { %v260_v0 = vld [vmem:[%s552_s0 + $0xb] ss:$16 sm:%s19_s6]   ;;  %s27_s12 = smov 48  ;;  %s32_s13 = smov 192  ;;  %vm38_vm4 = vcmask 490936   ;;  %vm60_vm5 = vcmask 449936  }
   0x2   :  { %v261_v1 = vld [vmem:[%s552_s0 + $0xb] ss:$16 sm:%s22_s7]   ;;  %s63_s18 = smov 3  ;;  %s66_s21 = smov 12  ;;  %vm82_vm6 = vcmask 408936   ;;  %vm104_vm7 = vcmask 367936  }
   0x3   :  { %v25_v2 = vsel %vm6_vm0, %v261_v1, %v260_v0  ;;  %v262_v3 = vld [vmem:[%s552_s0 + $0xb] ss:$16 sm:%s27_s12]   ;;  %v268_v6 = vld [vmem:[%s552_s0 + $0x9] ss:$16 sm:%s63_s18]   ;;  %s71_s22 = smov 48  ;;  %s76_s27 = smov 192 }
   0x4   :  { %v263_v4 = vld [vmem:[%s552_s0 + $0xb] ss:$16 sm:%s32_s13]   ;;  %v30_v5 = vsel %vm10_vm1, %v262_v3, %v25_v2  ;;  %v269_v8 = vld [vmem:[%s552_s0 + $0x9] ss:$16 sm:%s66_s21]   ;;  %s315_s28 = smov 55   ;;  %s41_s2 = smov 3 }
   0x5   :  { %v35_v7 = vsel %vm14_vm2, %v263_v4, %v30_v5  ;;  %v270_v9 = vld [vmem:[%s552_s0 + $0x9] ss:$16 sm:%s71_s22]   ;;  %v69_v10 = vsel %vm6_vm0, %v269_v8, %v268_v6  ;;  %s44_s3 = smov 12  ;;  %v264_v13 = vld [vmem:[%s552_s0 + $0xa] ss:$16 sm:%s41_s2]   ;;  %s49_s8 = smov 48 }
   0x6   :  { %36 = vrot.lane.b32.xlu0 %v35_v7, %s315_s28  ;;  %v271_v11 = vld [vmem:[%s552_s0 + $0x9] ss:$16 sm:%s76_s27]   ;;  %v74_v12 = vsel %vm10_vm1, %v270_v9, %v69_v10  ;;  %s54_s9 = smov 192  ;;  %s85_s14 = smov 3  ;;  %vm126_vm8 = vcmask 326936   ;;  %vm148_vm9 = vcmask 285936  }
   0x7   :  { %v265_v14 = vld [vmem:[%s552_s0 + $0xa] ss:$16 sm:%s44_s3]   ;;  %v79_v15 = vsel %vm14_vm2, %v271_v11, %v74_v12  ;;  %s316_s15 = smov 45   ;;  %v272_v20 = vld [vmem:[%s552_s0 + $0x8] ss:$16 sm:%s85_s14]   ;;  %s88_s18 = smov 12 }
   0x8   :  { %v47_v16 = vsel %vm6_vm0, %v265_v14, %v264_v13  ;;  %v266_v17 = vld [vmem:[%s552_s0 + $0xa] ss:$16 sm:%s49_s8]   ;;  %80 = vrot.lane.b32.xlu1 %v79_v15, %s316_s15  ;;  %s93_s19 = smov 48  ;;  %s98_s24 = smov 192  ;;  %vm170_vm10 = vcmask 244936   ;;  %vm192_vm11 = vcmask 203936  }
   0x9   :  { %v267_v18 = vld [vmem:[%s552_s0 + $0xa] ss:$16 sm:%s54_s9]   ;;  %v52_v19 = vsel %vm10_vm1, %v266_v17, %v47_v16  ;;  %v273_v22 = vld [vmem:[%s552_s0 + $0x8] ss:$16 sm:%s88_s18]   ;;  %s317_s25 = smov 50   ;;  %s107_s28 = smov 3 }
   0xa   :  { %v57_v21 = vsel %vm14_vm2, %v267_v18, %v52_v19  ;;  %v274_v23 = vld [vmem:[%s552_s0 + $0x8] ss:$16 sm:%s93_s19]   ;;  %v91_v24 = vsel %vm6_vm0, %v273_v22, %v272_v20  ;;  %s110_s29 = smov 12  ;;  %v276_v27 = vld [vmem:[%s552_s0 + $0x7] ss:$16 sm:%s107_s28]   ;;  %s115_s5 = smov 48 }
   0xb   :  { %58 = vrot.lane.b32.xlu0 %v57_v21, %s317_s25  ;;  %v275_v25 = vld [vmem:[%s552_s0 + $0x8] ss:$16 sm:%s98_s24]   ;;  %v96_v26 = vsel %vm10_vm1, %v274_v23, %v91_v24  ;;  %s120_s6 = smov 192  ;;  %s129_s11 = smov 3  ;;  %vm214_vm12 = vcmask 162936   ;;  %vm236_vm13 = vcmask 121936  }
   0xc   :  { %v277_v28 = vld [vmem:[%s552_s0 + $0x7] ss:$16 sm:%s110_s29]   ;;  %v101_v29 = vsel %vm14_vm2, %v275_v25, %v96_v26  ;;  %s318_s12 = smov 40   ;;  %v280_v34 = vld [vmem:[%s552_s0 + $0x6] ss:$16 sm:%s129_s11]   ;;  %s132_s15 = smov 12 }
   0xd   :  { %v113_v30 = vsel %vm6_vm0, %v277_v28, %v276_v27  ;;  %v278_v31 = vld [vmem:[%s552_s0 + $0x7] ss:$16 sm:%s115_s5]   ;;  %102 = vrot.lane.b32.xlu1 %v101_v29, %s318_s12  ;;  %s137_s16 = smov 48  ;;  %s142_s21 = smov 192  ;;  %vm258_vm14 = vcmask 80936  }
   0xe   :  { %v279_v32 = vld [vmem:[%s552_s0 + $0x7] ss:$16 sm:%s120_s6]   ;;  %v118_v33 = vsel %vm10_vm1, %v278_v31, %v113_v30  ;;  %v281_v36 = vld [vmem:[%s552_s0 + $0x6] ss:$16 sm:%s132_s15]   ;;  %s319_s22 = smov 35   ;;  %s151_s25 = smov 3 }
   0xf   :  { %v123_v35 = vsel %vm14_vm2, %v279_v32, %v118_v33  ;;  %v282_v37 = vld [vmem:[%s552_s0 + $0x6] ss:$16 sm:%s137_s16]   ;;  %v135_v38 = vsel %vm6_vm0, %v281_v36, %v280_v34  ;;  %s154_s26 = smov 12  ;;  %v284_v41 = vld [vmem:[%s552_s0 + $0x5] ss:$16 sm:%s151_s25]   ;;  %s159_s2 = smov 48 }
  0x10   :  { %124 = vrot.lane.b32.xlu0 %v123_v35, %s319_s22  ;;  %v283_v39 = vld [vmem:[%s552_s0 + $0x6] ss:$16 sm:%s142_s21]   ;;  %v140_v40 = vsel %vm10_vm1, %v282_v37, %v135_v38  ;;  %s164_s3 = smov 192  ;;  %s173_s8 = smov 3 }
  0x11   :  { %v285_v42 = vld [vmem:[%s552_s0 + $0x5] ss:$16 sm:%s154_s26]   ;;  %v145_v43 = vsel %vm14_vm2, %v283_v39, %v140_v40  ;;  %s320_s9 = smov 30   ;;  %v288_v48 = vld [vmem:[%s552_s0 + $0x4] ss:$16 sm:%s173_s8]   ;;  %s176_s12 = smov 12 }
  0x12   :  { %v157_v44 = vsel %vm6_vm0, %v285_v42, %v284_v41  ;;  %v286_v45 = vld [vmem:[%s552_s0 + $0x5] ss:$16 sm:%s159_s2]   ;;  %146 = vrot.lane.b32.xlu1 %v145_v43, %s320_s9  ;;  %s181_s13 = smov 48  ;;  %s186_s18 = smov 192 }
  0x13   :  { %v287_v46 = vld [vmem:[%s552_s0 + $0x5] ss:$16 sm:%s164_s3]   ;;  %v162_v47 = vsel %vm10_vm1, %v286_v45, %v157_v44  ;;  %v289_v50 = vld [vmem:[%s552_s0 + $0x4] ss:$16 sm:%s176_s12]   ;;  %s321_s19 = smov 25   ;;  %s195_s22 = smov 3 }
  0x14   :  { %v167_v49 = vsel %vm14_vm2, %v287_v46, %v162_v47  ;;  %v290_v51 = vld [vmem:[%s552_s0 + $0x4] ss:$16 sm:%s181_s13]   ;;  %v179_v52 = vsel %vm6_vm0, %v289_v50, %v288_v48  ;;  %s198_s23 = smov 12  ;;  %v292_v55 = vld [vmem:[%s552_s0 + $0x3] ss:$16 sm:%s195_s22]   ;;  %s203_s28 = smov 48 }
  0x15   :  { %168 = vrot.lane.b32.xlu0 %v167_v49, %s321_s19  ;;  %v291_v53 = vld [vmem:[%s552_s0 + $0x4] ss:$16 sm:%s186_s18]   ;;  %v184_v54 = vsel %vm10_vm1, %v290_v51, %v179_v52  ;;  %s208_s29 = smov 192  ;;  %s217_s5 = smov 3 }
  0x16   :  { %v293_v56 = vld [vmem:[%s552_s0 + $0x3] ss:$16 sm:%s198_s23]   ;;  %v189_v57 = vsel %vm14_vm2, %v291_v53, %v184_v54  ;;  %s322_s6 = smov 20   ;;  %v296_v62 = vld [vmem:[%s552_s0 + $0x2] ss:$16 sm:%s217_s5]   ;;  %s220_s9 = smov 12 }
  0x17   :  { %v201_v58 = vsel %vm6_vm0, %v293_v56, %v292_v55  ;;  %v294_v59 = vld [vmem:[%s552_s0 + $0x3] ss:$16 sm:%s203_s28]   ;;  %190 = vrot.lane.b32.xlu1 %v189_v57, %s322_s6  ;;  %s225_s10 = smov 48  ;;  %s230_s15 = smov 192 }
  0x18   :  { %v295_v60 = vld [vmem:[%s552_s0 + $0x3] ss:$16 sm:%s208_s29]   ;;  %v206_v61 = vsel %vm10_vm1, %v294_v59, %v201_v58  ;;  %v297_v0 = vld [vmem:[%s552_s0 + $0x2] ss:$16 sm:%s220_s9]   ;;  %s323_s16 = smov 15   ;;  %s239_s19 = smov 3 }
  0x19   :  { %v211_v63 = vsel %vm14_vm2, %v295_v60, %v206_v61  ;;  %v298_v1 = vld [vmem:[%s552_s0 + $0x2] ss:$16 sm:%s225_s10]   ;;  %v223_v2 = vsel %vm6_vm0, %v297_v0, %v296_v62  ;;  %s242_s20 = smov 12  ;;  %v300_v5 = vld [vmem:[%s552_s0 + $0x1] ss:$16 sm:%s239_s19]   ;;  %s247_s25 = smov 48 }
  0x1a   :  { %212 = vrot.lane.b32.xlu0 %v211_v63, %s323_s16  ;;  %v299_v3 = vld [vmem:[%s552_s0 + $0x2] ss:$16 sm:%s230_s15]   ;;  %v228_v4 = vsel %vm10_vm1, %v298_v1, %v223_v2  ;;  %s252_s26 = smov 192  ;;  %s2_s2 = smov 3 }
  0x1b   :  { %v301_v6 = vld [vmem:[%s552_s0 + $0x1] ss:$16 sm:%s242_s20]   ;;  %v233_v7 = vsel %vm14_vm2, %v299_v3, %v228_v4  ;;  %s324_s3 = smov 10   ;;  %s4_s4 = smov 12  ;;  %v3_v12 = vld [vmem:[%s552_s0] ss:$16 sm:%s2_s2]  }
  0x1c   :  { %v245_v8 = vsel %vm6_vm0, %v301_v6, %v300_v5  ;;  %v302_v9 = vld [vmem:[%s552_s0 + $0x1] ss:$16 sm:%s247_s25]   ;;  %234 = vrot.lane.b32.xlu1 %v233_v7, %s324_s3  ;;  %s8_s5 = smov 48  ;;  %s12_s8 = smov 192 }
  0x1d   :  { %v303_v10 = vld [vmem:[%s552_s0 + $0x1] ss:$16 sm:%s252_s26]   ;;  %v250_v11 = vsel %vm10_vm1, %v302_v9, %v245_v8  ;;  %v5_v14 = vld [vmem:[%s552_s0] ss:$16 sm:%s4_s4]   ;;  %s325_s13 = smov 5  }
  0x1e   :  { %v255_v13 = vsel %vm14_vm2, %v303_v10, %v250_v11  ;;  %v9_v15 = vld [vmem:[%s552_s0] ss:$16 sm:%s8_s5]   ;;  %v7_v16 = vsel %vm6_vm0, %v5_v14, %v3_v12 }
  0x1f   :  { %256 = vrot.lane.b32.xlu0 %v255_v13, %s325_s13  ;;  %v13_v17 = vld [vmem:[%s552_s0] ss:$16 sm:%s12_s8]   ;;  %v11_v18 = vsel %vm10_vm1, %v9_v15, %v7_v16 }
  0x20   :  { %v15_v19 = vsel %vm14_vm2, %v13_v17, %v11_v18 }
  0x21   :  { %17 = vst.msk [vmem:[%s553_s1] sm:$0xff] %vm16_vm3, %v15_v19  }
  0x78   :  { %v37_v20 = vpop.permute.xlu0 %36  }
  0x79   :  { %39 = vst.msk [vmem:[%s553_s1] sm:$0xff] %vm38_vm4, %v37_v20  }
  0x7a   :  { %v81_v21 = vpop.permute.xlu1 %80  }
  0x7d   :  { %v59_v22 = vpop.permute.xlu0 %58  }
  0x7e   :  { %61 = vst.msk [vmem:[%s553_s1] sm:$0xff] %vm60_vm5, %v59_v22  }
  0x7f   :  { %83 = vst.msk [vmem:[%s553_s1] sm:$0xff] %vm82_vm6, %v81_v21   ;;  %v103_v23 = vpop.permute.xlu1 %102  }
  0x80   :  { %105 = vst.msk [vmem:[%s553_s1] sm:$0xff] %vm104_vm7, %v103_v23  }
  0x82   :  { %v125_v24 = vpop.permute.xlu0 %124  }
  0x83   :  { %127 = vst.msk [vmem:[%s553_s1] sm:$0xff] %vm126_vm8, %v125_v24  }
  0x84   :  { %v147_v25 = vpop.permute.xlu1 %146  }
  0x85   :  { %149 = vst.msk [vmem:[%s553_s1] sm:$0xff] %vm148_vm9, %v147_v25  }
  0x87   :  { %v169_v26 = vpop.permute.xlu0 %168  }
  0x88   :  { %171 = vst.msk [vmem:[%s553_s1] sm:$0xff] %vm170_vm10, %v169_v26  }
  0x89   :  { %v191_v27 = vpop.permute.xlu1 %190  }
  0x8a   :  { %193 = vst.msk [vmem:[%s553_s1] sm:$0xff] %vm192_vm11, %v191_v27  }
  0x8c   :  { %v213_v28 = vpop.permute.xlu0 %212  }
  0x8d   :  { %215 = vst.msk [vmem:[%s553_s1] sm:$0xff] %vm214_vm12, %v213_v28  }
  0x8e   :  { %v235_v29 = vpop.permute.xlu1 %234  }
  0x8f   :  { %237 = vst.msk [vmem:[%s553_s1] sm:$0xff] %vm236_vm13, %v235_v29  }
  0x91   :  { %v257_v30 = vpop.permute.xlu0 %256  }
  0x92   :  { %259 = vst.msk [vmem:[%s553_s1] sm:$0xff] %vm258_vm14, %v257_v30  }

// kernel: squeeze.3
= control target key start
LH: loop header
LB: loop body
LE: loop exit
PB: predicated region body
PF: predicated region fallthrough
CT: control target
= control target key end

     0   :  { %s85_s0 = inlined_call_operand.vmem [shape: f32[8], index: 0, kind: input, shape index: {}]   ;;  %s86_s1 = inlined_call_operand.hbm [shape: f32[2,4,1], index: 1, kind: output, shape index: {}]  }
   0x1   :  { %v5_v0 = vld [vmem:[%s85_s0] sm:$0x1] }
   0x2   :  { %2 = vsyncpa [#allocation1], 0  ;;  %6 = vst [vmem:[#allocation3] sm:$0x1] %v5_v0  ;;  %vm8_vm0 = vcmask 31744   ;;  %s58_s0 = smov 124  }
   0x3   :  { %s59_s8 = smov [#allocation0]  }
   0x4   :  { %s26_s9 = sshll.u32 %s59_s8, 4  ;;  %s27_s9 = int_to_ptr.vmem [resolvable:$true] %s26_s9 }
   0x5   :  { %s34_s10 = scalar_lea.vmem %s27_s9, 32  ;;  %p39_p1 = scmp.lt.s32.totalorder %s27_s9, %s27_s9 }
   0x6   :  { %p35_p0 = scmp.ne.s32.totalorder %s27_s9, %s34_s10  ;;  %p40_p2 = scmp.lt.s32.totalorder %s34_s10, %s34_s10 }
   0x8   :  { %p41_p3 = por %p40_p2, %p39_p1 }
   0x9   :  { %v10_v1 = vld [vmem:[#allocation3] sm:$0x1]  }
   0xa   :  { %v7_v2 = vld [vmem:[#allocation3] sm:$0x1]   ;;  %11 = vrot.lane.b32.xlu0 %v10_v1, %s58_s0  ;;  %p42_p4 = pnand %p41_p3, %p35_p0 }
   0xb   :  { %9 = vst.msk [vmem:[#allocation2] sm:$0x1] %vm8_vm0, %v7_v2  }
  0x7c   :  { %v12_v3 = vpop.permute.xlu0 %11  }
  0x7d   :  { %15 = vst.msk [vmem:[#allocation2 + $0x1] sm:$0x1] %vm8_vm0, %v12_v3  }
  0x84   :  { %v19_v4 = vld [vmem:[#allocation2] sm:$0x3] }
  0x85   :  { %21 = vst [vmem:[#allocation0] sm:$0x3] %v19_v4 }
  0x86   :  { %45 = shalt.err (!%p42_p4)
}
  0x87   :  { %s46_s13 = scalar_lea.hbm %s86_s1, 32 }
  0x88   :  { %p47_p5 = scmp.ne.s32.totalorder %s86_s1, %s46_s13  ;;  %p50_p6 = scmp.lt.u32.totalorder %s46_s13, %s86_s1 }
  0x8a   :  { %p52_p7 = pnand %p50_p6, %p47_p5 }
  0x8c   :  { %55 = shalt.err (!%p52_p7)
}
  0x8d   :  { %29 = dma.vmem_to_hbm [thread:$0]  %s27_s9, 32, %s86_s1, [#allocation1]  }
  0x8e   :  { %56 = dma.done.wait [#allocation1], 32  }
  0x8f   :  { %57 = vsyncadd [#allocation1], 4294967264 }
  0x90   :  { %31 = vsyncpa [#allocation1], 1 }

// kernel: critic_forward.1
= control target key start
LH: loop header
LB: loop body
LE: loop exit
PB: predicated region body
PF: predicated region fallthrough
CT: control target
= control target key end

     0   :  { %v778_v0 = vmov 0   ;;  %v779_v4 = vmov 0.0   ;;  %vm173_vm0 = vcmask 523264   ;;  %v60_v30 = vlaneseq  ;;  %s1150_s0 = inlined_call_operand.vmem [shape: s32[8,1], index: 0, kind: input, shape index: {}]   ;;  %s1151_s3 = inlined_call_operand.vmem [shape: f32[64,256], index: 3, kind: input, shape index: {}]   ;;  %s1152_s2 = inlined_call_operand.vmem [shape: f32[8,256], index: 2, kind: input, shape index: {}]   ;;  %s1153_s1 = inlined_call_operand.vmem [shape: f32[8,64], index: 1, kind: input, shape index: {}]   ;;  %s1154_s4 = inlined_call_operand.vmem [shape: f32[1,256], index: 4, kind: input, shape index: {}]   ;;  %s1155_s7 = inlined_call_operand.vmem [shape: f32[256,128], index: 7, kind: input, shape index: {}]   ;;  %s1156_s5 = inlined_call_operand.vmem [shape: f32[1,256], index: 5, kind: input, shape index: {}]   ;;  %s1157_s6 = inlined_call_operand.vmem [shape: f32[1,256], index: 6, kind: input, shape index: {}]   ;;  %s1158_s8 = inlined_call_operand.vmem [shape: f32[1,128], index: 8, kind: input, shape index: {}]   ;;  %s1159_s11 = inlined_call_operand.vmem [shape: f32[128,64], index: 11, kind: input, shape index: {}]   ;;  %s1160_s9 = inlined_call_operand.vmem [shape: f32[1,128], index: 9, kind: input, shape index: {}]   ;;  %s1161_s10 = inlined_call_operand.vmem [shape: f32[1,128], index: 10, kind: input, shape index: {}]   ;;  %s1162_s12 = inlined_call_operand.vmem [shape: f32[1,64], index: 12, kind: input, shape index: {}]   ;;  %s1163_s16 = inlined_call_operand.<no memory space> [shape: f32[1,1], index: 16, kind: input, shape index: {}]   ;;  %s1164_s13 = inlined_call_operand.vmem [shape: f32[1,64], index: 13, kind: input, shape index: {}]   ;;  %s1165_s14 = inlined_call_operand.vmem [shape: f32[1,64], index: 14, kind: input, shape index: {}]   ;;  %s1166_s15 = inlined_call_operand.vmem [shape: f32[1,64], index: 15, kind: input, shape index: {}]   ;;  %s1167_s17 = inlined_call_operand.vmem [shape: f32[1,8], index: 17, kind: output, shape index: {}]  }
   0x1   :  { %1169 = sst [smem:[#allocation3_spill]] %s1150_s0  ;;  %770 = vset.pattern.permute.xlu0 %v778_v0  ;;  %138 = vmatprep.mubr.f32.mxu1 %v779_v4  ;;  %v69_v20 = vld [vmem:[%s1152_s2 + $0x8] sm:$0xff]  ;;  %v68_v23 = vld [vmem:[%s1152_s2] sm:$0xff]  ;;  %vm70_vm1 = vcmask 64512   ;;  %v315_v54 = vld [vmem:[%s1155_s7 + $0x90] sm:$0xff]  ;;  %vm781_vm3 = vmmov 0  }
   0x2   :  { %1170 = sst [smem:[#allocation4_spill]] %s1151_s3  ;;  %s1171_s26 = sld [smem:[#allocation3_spill]]  ;;  %241 = vmatprep.mubr.f32.mxu0 %v779_v4  ;;  %771 = vset.pattern.permute.xlu1 %v778_v0  ;;  %v58_v29 = vld [vmem:[%s1153_s1] sm:$0xff]  ;;  %v935_v31 = vand.u32 127, %v60_v30  ;;  %v939_v36 = vshrl.u32 %v60_v30, 7  ;;  %v314_v50 = vld [vmem:[%s1155_s7 + $0x88] sm:$0xff] }
   0x3   :  { %s1172_s29 = sld [smem:[#allocation4_spill]]  ;;  %74 = vmatprep.subr.mxu1 %v69_v20  ;;  %v161_v38 = vld [vmem:[%s1154_s4] sm:$0x3]  ;;  %v298_v53 = vld [vmem:[%s1155_s7 + $0x8] sm:$0xff]  ;;  %v316_v55 = vld [vmem:[%s1155_s7 + $0x98] sm:$0xff]  ;;  %vm587_vm4 = vcmask 57344  }
   0x4   :  { %75 = vmatpush1.msra.mxu1 %v68_v23  ;;  %v942_v37 = vsub.s32 0, %v939_v36  ;;  %v948_v39 = vsub.s32 1, %v939_v36  ;;  %v313_v49 = vld [vmem:[%s1155_s7 + $0x80] sm:$0xff]  ;;  %v710_v57 = vpack.c.bf16 %v316_v55, %v315_v54  ;;  %v299_v58 = vld [vmem:[%s1155_s7 + $0x10] sm:$0xff]  ;;  %v300_v59 = vld [vmem:[%s1155_s7 + $0x18] sm:$0xff] }
   0x5   :  { %v297_v51 = vld [vmem:[%s1155_s7] sm:$0xff]  ;;  %v706_v52 = vpack.c.bf16 %v314_v50, %v313_v49  ;;  %v712_v60 = vpack.c.bf16 %v300_v59, %v299_v58  ;;  %v324_v23 = vld [vmem:[%s1155_s7 + $0xd8] sm:$0xff] }
   0x6   :  { %v166_v40 = vrot.slane %v161_v38, %v942_v37  ;;  %v170_v41 = vrot.slane %v161_v38, %v948_v39  ;;  %v708_v56 = vpack.c.bf16 %v298_v53, %v297_v51  ;;  %v328_v38 = vld [vmem:[%s1155_s7 + $0xf8] sm:$0xff]  ;;  %v251_v49 = vld [vmem:[%s1157_s6] sm:$0x3] }
   0x7   :  { %707 = vmatprep.subr.bf16.mxu1 %v706_v52  ;;  %v286_v54 = vrot.slane %v251_v49, %v942_v37  ;;  %v290_v55 = vrot.slane %v251_v49, %v948_v39 }
   0x8   :  { %v59_v1 = vld [vmem:[%s1171_s26] sm:$0xff] }
   0x9   :  { %v146_v2 = vld [vmem:[%s1172_s29 + $0x8] sm:$0xff]  ;;  %v148_v3 = vld [vmem:[%s1172_s29 + $0x18] sm:$0xff]  ;;  %63 = vperm.xlu0 %770, %v59_v1   ;;  %v145_v6 = vld [vmem:[%s1172_s29] sm:$0xff] }
   0xa   :  { %v690_v5 = vpack.c.bf16 %v148_v3, %v146_v2  ;;  %v147_v7 = vld [vmem:[%s1172_s29 + $0x10] sm:$0xff]  ;;  %v150_v8 = vld [vmem:[%s1172_s29 + $0x28] sm:$0xff]  ;;  %v152_v10 = vld [vmem:[%s1172_s29 + $0x38] sm:$0xff] }
   0xb   :  { %v692_v9 = vpack.c.bf16 %v147_v7, %v145_v6  ;;  %v149_v11 = vld [vmem:[%s1172_s29 + $0x20] sm:$0xff]  ;;  %v151_v12 = vld [vmem:[%s1172_s29 + $0x30] sm:$0xff]  ;;  %v694_v13 = vpack.c.bf16 %v152_v10, %v150_v8  ;;  %v154_v14 = vld [vmem:[%s1172_s29 + $0x48] sm:$0xff] }
   0xc   :  { %691 = vmatprep.subr.bf16.mxu0 %v690_v5  ;;  %v156_v15 = vld [vmem:[%s1172_s29 + $0x58] sm:$0xff]  ;;  %v696_v16 = vpack.c.bf16 %v151_v12, %v149_v11  ;;  %v153_v18 = vld [vmem:[%s1172_s29 + $0x40] sm:$0xff]  ;;  %v155_v19 = vld [vmem:[%s1172_s29 + $0x50] sm:$0xff] }
   0xd   :  { %693 = vmatpush1.bf16.msra.mxu0 %v692_v9  ;;  %v698_v17 = vpack.c.bf16 %v156_v15, %v154_v14  ;;  %v158_v21 = vld [vmem:[%s1172_s29 + $0x68] sm:$0xff]  ;;  %v160_v22 = vld [vmem:[%s1172_s29 + $0x78] sm:$0xff]  ;;  %v700_v24 = vpack.c.bf16 %v155_v19, %v153_v18  ;;  %v157_v26 = vld [vmem:[%s1172_s29 + $0x60] sm:$0xff] }
   0xe   :  { %695 = vmatprep.subr.bf16.mxu0 %v694_v13  ;;  %v702_v25 = vpack.c.bf16 %v160_v22, %v158_v21  ;;  %v159_v27 = vld [vmem:[%s1172_s29 + $0x70] sm:$0xff]  ;;  %v317_v5 = vld [vmem:[%s1155_s7 + $0xa0] sm:$0xff]  ;;  %v318_v6 = vld [vmem:[%s1155_s7 + $0xa8] sm:$0xff] }
   0xf   :  { %v704_v28 = vpack.c.bf16 %v159_v27, %v157_v26  ;;  %v714_v7 = vpack.c.bf16 %v318_v6, %v317_v5  ;;  %v301_v8 = vld [vmem:[%s1155_s7 + $0x20] sm:$0xff]  ;;  %v302_v9 = vld [vmem:[%s1155_s7 + $0x28] sm:$0xff]  ;;  %v319_v11 = vld [vmem:[%s1155_s7 + $0xb0] sm:$0xff] }
  0x10   :  { %v716_v10 = vpack.c.bf16 %v302_v9, %v301_v8  ;;  %v320_v12 = vld [vmem:[%s1155_s7 + $0xb8] sm:$0xff]  ;;  %v303_v14 = vld [vmem:[%s1155_s7 + $0x30] sm:$0xff]  ;;  %v322_v18 = vld [vmem:[%s1155_s7 + $0xc8] sm:$0xff] }
  0x11   :  { %697 = vmatpush1.bf16.msra.mxu0 %v696_v16  ;;  %v718_v13 = vpack.c.bf16 %v320_v12, %v319_v11  ;;  %v304_v15 = vld [vmem:[%s1155_s7 + $0x38] sm:$0xff]  ;;  %v305_v19 = vld [vmem:[%s1155_s7 + $0x40] sm:$0xff]  ;;  %v306_v21 = vld [vmem:[%s1155_s7 + $0x48] sm:$0xff] }
  0x12   :  { %699 = vmatprep.subr.bf16.mxu0 %v698_v17  ;;  %v720_v16 = vpack.c.bf16 %v304_v15, %v303_v14  ;;  %v321_v17 = vld [vmem:[%s1155_s7 + $0xc0] sm:$0xff]  ;;  %v323_v22 = vld [vmem:[%s1155_s7 + $0xd0] sm:$0xff]  ;;  %v308_v27 = vld [vmem:[%s1155_s7 + $0x58] sm:$0xff] }
  0x13   :  { %v722_v20 = vpack.c.bf16 %v322_v18, %v321_v17  ;;  %v307_v26 = vld [vmem:[%s1155_s7 + $0x50] sm:$0xff]  ;;  %v436_v6 = vld [vmem:[%s1159_s11 + $0x8] sm:$0xff]  ;;  %v438_v9 = vld [vmem:[%s1159_s11 + $0x18] sm:$0xff] }
  0x14   :  { %v728_v30 = vpack.c.bf16 %v308_v27, %v307_v26  ;;  %v439_v15 = vld [vmem:[%s1159_s11 + $0x20] sm:$0xff]  ;;  %v441_v18 = vld [vmem:[%s1159_s11 + $0x30] sm:$0xff] }
  0x15   :  { %701 = vmatpush1.bf16.msra.mxu0 %v700_v24  ;;  %v724_v24 = vpack.c.bf16 %v306_v21, %v305_v19  ;;  %v442_v19 = vld [vmem:[%s1159_s11 + $0x38] sm:$0xff]  ;;  %v443_v21 = vld [vmem:[%s1159_s11 + $0x40] sm:$0xff] }
  0x16   :  { %703 = vmatprep.subr.bf16.mxu0 %v702_v25  ;;  %v726_v25 = vpack.c.bf16 %v324_v23, %v323_v22  ;;  %v444_v22 = vld [vmem:[%s1159_s11 + $0x48] sm:$0xff]  ;;  %v447_v27 = vld [vmem:[%s1159_s11 + $0x60] sm:$0xff] }
  0x17   :  { %v751_v23 = vpack.c.bf16 %v444_v22, %v443_v21 }
  0x19   :  { %705 = vmatpush1.bf16.msra.mxu0 %v704_v28  ;;  %v325_v28 = vld [vmem:[%s1155_s7 + $0xe0] sm:$0xff] }
  0x1c   :  { %595 = vmatmul.mubr.msk.f32.vlgmr.msra.gmra.mrb[0].mxu0 %vm173_vm0, %v58_v29  ;;  %v326_v29 = vld [vmem:[%s1155_s7 + $0xe8] sm:$0xff] }
  0x1d   :  { %687 = vmatprep.mubr.msk.f32.mxu0 %vm781_vm3, %v779_v4 }
  0x88   :  { %v64_v32 = vpop.permute.xlu0 %63 }
  0x89   :  { %vm65_vm2 = vcmp.eq.s32.totalorder %v935_v31, %v64_v32  ;;  %v730_v32 = vpack.c.bf16 %v326_v29, %v325_v28  ;;  %v448_v28 = vld [vmem:[%s1159_s11 + $0x68] sm:$0xff] }
  0x8a   :  { %v593_v33 = vsel %vm65_vm2, 1.0, %v779_v4  ;;  %v757_v29 = vpack.c.bf16 %v448_v28, %v447_v27  ;;  %v450_v4 = vld [vmem:[%s1159_s11 + $0x78] sm:$0xff] }
  0x8b   :  { %594 = vmatmul.mubr.msk.f32.vlgmr.msra.gmra.mrb[0].mxu1 %vm70_vm1, %v593_v33  ;;  %v309_v33 = vld [vmem:[%s1155_s7 + $0x60] sm:$0xff] }
  0x8c   :  { %709 = vmatpush3.bf16.msra.mxu1 %v708_v56 }
  0x8d   :  { %711 = vmatprep.subr.bf16.mxu1 %v710_v57 }
  0x90   :  { %713 = vmatpush3.bf16.msra.mxu1 %v712_v60 }
  0x91   :  { %715 = vmatprep.subr.bf16.mxu1 %v714_v7  ;;  %v437_v7 = vld [vmem:[%s1159_s11 + $0x10] sm:$0xff] }
  0x94   :  { %717 = vmatpush3.bf16.msra.mxu1 %v716_v10  ;;  %v742_v10 = vpack.c.bf16 %v438_v9, %v437_v7  ;;  %v584_v9 = vsub.s32 %v935_v31, %v939_v36 }
  0x95   :  { %719 = vmatprep.subr.bf16.mxu1 %v718_v13 }
  0x98   :  { %721 = vmatpush3.bf16.msra.mxu1 %v720_v16  ;;  %v440_v16 = vld [vmem:[%s1159_s11 + $0x28] sm:$0xff] }
  0x99   :  { %723 = vmatprep.subr.bf16.mxu1 %v722_v20  ;;  %v745_v17 = vpack.c.bf16 %v440_v16, %v439_v15  ;;  %v748_v20 = vpack.c.bf16 %v442_v19, %v441_v18 }
  0x9c   :  { %725 = vmatpush3.bf16.msra.mxu1 %v724_v24  ;;  %v445_v24 = vld [vmem:[%s1159_s11 + $0x50] sm:$0xff] }
  0x9d   :  { %727 = vmatprep.subr.bf16.mxu1 %v726_v25  ;;  %v446_v25 = vld [vmem:[%s1159_s11 + $0x58] sm:$0xff] }
  0x9e   :  { %v754_v26 = vpack.c.bf16 %v446_v25, %v445_v24 }
  0xa0   :  { %729 = vmatpush3.bf16.msra.mxu1 %v728_v30  ;;  %v449_v30 = vld [vmem:[%s1159_s11 + $0x70] sm:$0xff] }
  0xa1   :  { %731 = vmatprep.subr.bf16.mxu1 %v730_v32  ;;  %v760_v32 = vpack.c.bf16 %v450_v4, %v449_v30 }
  0xef   :  { %v243_v34 = vpop.f32.mrb[0].mxu0 }
  0xf0   :  { %v245_v35 = vpop.f32.mrb[1].mxu0 }
 0x15e   :  { %v140_v42 = vpop.f32.mrb[0].mxu1 }
 0x15f   :  { %v762_v43 = vadd.f32 %v166_v40, %v140_v42  ;;  %v142_v44 = vpop.f32.mrb[1].mxu1  ;;  %v311_v42 = vld [vmem:[%s1155_s7 + $0x70] sm:$0xff] }
 0x160   :  { %v764_v45 = vadd.f32 %v170_v41, %v142_v44 }
 0x161   :  { %v763_v46 = vadd.f32 %v762_v43, %v243_v34  ;;  %v310_v34 = vld [vmem:[%s1155_s7 + $0x68] sm:$0xff]  ;;  %v312_v43 = vld [vmem:[%s1155_s7 + $0x78] sm:$0xff] }
 0x162   :  { %v765_v47 = vadd.f32 %v764_v45, %v245_v35  ;;  %v327_v35 = vld [vmem:[%s1155_s7 + $0xf0] sm:$0xff]  ;;  %v732_v40 = vpack.c.bf16 %v310_v34, %v309_v33  ;;  %v736_v44 = vpack.c.bf16 %v312_v43, %v311_v42  ;;  %v598_v42 = vld [vmem:[%s1161_s10] ss:$0 sm:$0xff] }
 0x163   :  { %v734_v41 = vpack.c.bf16 %v328_v38, %v327_v35 }
 0x164   :  { %v252_v48 = vadd.f32 %v765_v47, %v763_v46  ;;  %733 = vmatpush3.bf16.msra.mxu1 %v732_v40  ;;  %v597_v40 = vld [vmem:[%s1160_s9] ss:$0 sm:$0xff] }
 0x165   :  { %735 = vmatprep.subr.bf16.mxu1 %v734_v41 }
 0x166   :  { %253 = vadd.xlane.f32.xlu0 %v252_v48  ;;  %v250_v48 = vld [vmem:[%s1156_s5] sm:$0x3] }
 0x167   :  { %v273_v50 = vrot.slane %v250_v48, %v942_v37  ;;  %v277_v51 = vrot.slane %v250_v48, %v948_v39  ;;  %v780_v39 = vmov 0.0|0.0  }
 0x168   :  { %737 = vmatpush3.bf16.msra.mxu1 %v736_v44  ;;  %738 = vmatprep.subr.bf16.mxu0 %v780_v39 }
 0x1f3   :  { %v254_v61 = vpop.xlane.xlu0 %253 }
 0x1f4   :  { %v256_v62 = vmul.f32 0.00390625, %v254_v61 }
 0x1f6   :  { %v976_v63 = vsub.f32 %v763_v46, %v256_v62  ;;  %v978_v0 = vsub.f32 %v765_v47, %v256_v62 }
 0x1f8   :  { %v259_v1 = vmul.f32 %v976_v63, %v976_v63  ;;  %v260_v2 = vmul.f32 %v978_v0, %v978_v0 }
 0x1fa   :  { %v261_v3 = vadd.f32 %v260_v2, %v259_v1 }
 0x1fc   :  { %262 = vadd.xlane.f32.xlu1 %v261_v3 }
 0x289   :  { %v263_v45 = vpop.xlane.xlu1 %262 }
 0x28a   :  { %v264_v46 = vmul.f32 0.00390625, %v263_v45 }
 0x28c   :  { %v265_v47 = vadd.f32 1e-05, %v264_v46  ;;  %v599_v46 = vld [vmem:[%s1162_s12] ss:$0 sm:$0xff] }
 0x28e   :  { %772 = vrsqrt.f32 %v265_v47 }
 0x298   :  { %v773_v52 = vpop.eup %772 }
 0x299   :  { %v268_v53 = vmul.f32 %v773_v52, %v978_v0  ;;  %v267_v56 = vmul.f32 %v773_v52, %v976_v63  ;;  %v596_v0 = vld [vmem:[%s1158_s8] ss:$0 sm:$0xff] }
 0x29a   :  { %v435_v63 = vld [vmem:[%s1159_s11] sm:$0xff] }
 0x29b   :  { %v281_v57 = vmul.f32 %v277_v51, %v268_v53  ;;  %v280_v58 = vmul.f32 %v273_v50, %v267_v56  ;;  %v739_v8 = vpack.c.bf16 %v436_v6, %v435_v63  ;;  %v22_v56 = vstv %s1163_s16 }
 0x29c   :  { %23 = vst [vmem:[#allocation2] sm:$0x1] %v22_v56 }
 0x29d   :  { %v294_v59 = vadd.f32 %v290_v55, %v281_v57  ;;  %v293_v60 = vadd.f32 %v286_v54, %v280_v58  ;;  %740 = vmatpush3.bf16.msra.mxu0 %v739_v8 }
 0x29e   :  { %741 = vmatprep.subr.bf16.mxu0 %v780_v39 }
 0x29f   :  { %v296_v61 = vmax.f32 %v294_v59, 0.0  ;;  %v295_v62 = vmax.f32 %v293_v60, 0.0 }
 0x2a1   :  { %400 = vmatprep.mubr.f32.mxu1 %v296_v61  ;;  %743 = vmatpush3.bf16.msra.mxu0 %v742_v10  ;;  %v600_v61 = vld [vmem:[%s1164_s13] ss:$0 sm:$0xff] }
 0x2a2   :  { %401 = vmatmul.mubr.f32.vlgmr.msra.gmra.mrb[2].mxu1 %v295_v62  ;;  %744 = vmatprep.subr.bf16.mxu0 %v780_v39 }
 0x2a3   :  { %v570_v6 = vld [vmem:[#allocation2] sm:$0x1] }
 0x2a5   :  { %746 = vmatpush3.bf16.msra.mxu0 %v745_v17 }
 0x2a6   :  { %747 = vmatprep.subr.bf16.mxu0 %v780_v39 }
 0x2a9   :  { %749 = vmatpush3.bf16.msra.mxu0 %v748_v20 }
 0x2aa   :  { %750 = vmatprep.subr.bf16.mxu0 %v780_v39 }
 0x2ad   :  { %752 = vmatpush3.bf16.msra.mxu0 %v751_v23 }
 0x2ae   :  { %753 = vmatprep.subr.bf16.mxu0 %v780_v39 }
 0x2b1   :  { %755 = vmatpush3.bf16.msra.mxu0 %v754_v26 }
 0x2b2   :  { %756 = vmatprep.subr.bf16.mxu0 %v780_v39 }
 0x2b5   :  { %758 = vmatpush3.bf16.msra.mxu0 %v757_v29 }
 0x2b6   :  { %759 = vmatprep.subr.bf16.mxu0 %v780_v39 }
 0x2b9   :  { %761 = vmatpush3.bf16.msra.mxu0 %v760_v32 }
 0x375   :  { %v635_v1 = vpop.f32.mrb[2].mxu1 }
 0x376   :  { %v636_v2 = vpop.f32.mrb[3].mxu1 }
 0x377   :  { %v637_v3 = vadd.f32 %v636_v2, %v635_v1  ;;  %v601_v1 = vld [vmem:[%s1165_s14] ss:$0 sm:$0xff] }
 0x379   :  { %v403_v5 = vadd.f32 %v637_v3, %v596_v0  ;;  %v602_v3 = vld [vmem:[%s1166_s15] ss:$0 sm:$0xff] }
 0x37b   :  { %408 = vadd.xlane.f32.xlu1 %v403_v5 }
 0x408   :  { %v409_v11 = vpop.xlane.xlu1 %408 }
 0x409   :  { %v411_v12 = vmul.f32 0.0078125, %v409_v11 }
 0x40b   :  { %v412_v13 = vsub.f32 %v403_v5, %v411_v12 }
 0x40d   :  { %v413_v14 = vmul.f32 %v412_v13, %v412_v13 }
 0x40f   :  { %414 = vadd.xlane.f32.xlu1 %v413_v14 }
 0x49c   :  { %v415_v33 = vpop.xlane.xlu1 %414 }
 0x49d   :  { %v416_v34 = vmul.f32 0.0078125, %v415_v33 }
 0x49f   :  { %v417_v35 = vadd.f32 1e-05, %v416_v34 }
 0x4a1   :  { %774 = vrsqrt.f32 %v417_v35 }
 0x4ab   :  { %v775_v38 = vpop.eup %774 }
 0x4ac   :  { %v419_v41 = vmul.f32 %v775_v38, %v412_v13 }
 0x4ae   :  { %v426_v43 = vmul.f32 %v597_v40, %v419_v41 }
 0x4b0   :  { %v433_v44 = vadd.f32 %v598_v42, %v426_v43 }
 0x4b2   :  { %v434_v45 = vmax.f32 %v433_v44, 0.0 }
 0x4b4   :  { %688 = vmatmul.mubr.f32.vlgmr.msra.gmra.mrb[2].mxu0 %v434_v45 }
 0x587   :  { %v524_v47 = vpop.f32.mrb[2].mxu0 }
 0x588   :  { %v525_v48 = vadd.f32 %v599_v46, %v524_v47  ;;  %v689_v49 = vpop.f32.mrb[3].mxu0 }
 0x58a   :  { %v530_v50 = vsel %vm173_vm0, %v525_v48, 0.0 }
 0x58b   :  { %531 = vadd.xlane.f32.xlu1 %v530_v50 }
 0x618   :  { %v532_v51 = vpop.xlane.xlu1 %531 }
 0x619   :  { %v534_v52 = vmul.f32 0.015625, %v532_v51 }
 0x61b   :  { %v535_v53 = vsub.f32 %v525_v48, %v534_v52 }
 0x61d   :  { %v536_v54 = vmul.f32 %v535_v53, %v535_v53 }
 0x61f   :  { %v537_v55 = vsel %vm173_vm0, %v536_v54, 0.0 }
 0x620   :  { %538 = vadd.xlane.f32.xlu1 %v537_v55 }
 0x6ad   :  { %v539_v57 = vpop.xlane.xlu1 %538 }
 0x6ae   :  { %v540_v58 = vmul.f32 0.015625, %v539_v57 }
 0x6b0   :  { %v541_v59 = vadd.f32 1e-05, %v540_v58 }
 0x6b2   :  { %776 = vrsqrt.f32 %v541_v59 }
 0x6bc   :  { %v777_v60 = vpop.eup %776 }
 0x6bd   :  { %v543_v62 = vmul.f32 %v777_v60, %v535_v53 }
 0x6bf   :  { %v550_v2 = vmul.f32 %v600_v61, %v543_v62 }
 0x6c1   :  { %v557_v0 = vadd.f32 %v601_v1, %v550_v2 }
 0x6c3   :  { %v558_v5 = vmax.f32 %v557_v0, 0.0 }
 0x6c5   :  { %v566_v39 = vmul.f32 %v602_v3, %v558_v5 }
 0x6c7   :  { %v567_v63 = vsel %vm173_vm0, %v566_v39, 0.0 }
 0x6c8   :  { %568 = vadd.xlane.f32.xlu1 %v567_v63 }
 0x6d9   :  { %573 = vperm.xlu1 %771, %v570_v6  }
 0x755   :  { %v569_v7 = vpop.xlane.xlu1 %568 }
 0x759   :  { %v574_v8 = vpop.permute.xlu1 %573 }
 0x75a   :  { %v579_v10 = vrot.slane %v574_v8, %v942_v37 }
 0x75c   :  { %v580_v11 = vadd.f32 %v579_v10, %v569_v7 }
 0x75e   :  { %v585_v12 = vrot.slane %v580_v11, %v584_v9 }
 0x760   :  { %588 = vst.msk [vmem:[%s1167_s17] sm:$0x1] %vm587_vm4, %v585_v12 }

</bundles_post_ra>
